<compile_context>
chip_gen: v5e
topology: v5e:2x2
jax: 0.10.0
libtpu: 0.0.40
codegen_flags: <defaults>
</compile_context>

<pallas_src>
import functools

import jax
import jax.numpy as jnp
from jax import lax
from jax.experimental import pallas as pl
from jax.experimental.pallas import tpu as pltpu


# ---------------------------------------------------------------------------
# Kernel: one batch-row tile of the 2-layer MLP.
#   y_ref: (TB, N_feat)  native layout, batch on sublanes
#   w1_ref: (N_neurons, N_feat)   b1_ref: (N_neurons, 1)
#   w2_ref: (N_feat, N_neurons)   b2_ref: (1, N_feat)
#   o_ref: (TB, N_feat)  native output layout
# ---------------------------------------------------------------------------
def odefunc_kernel(w1_ref, b1_ref, w2_ref, b2_ref, y_ref, o_ref):
    # Layer 1: contract feature dims of W1 (out, in) and y (TB, in).
    # The MXU consumes the transposed operand natively; the result lands in
    # (N_neurons, TB) batch-on-lanes layout without materializing y.T.
    h = lax.dot_general(
        w1_ref[...], y_ref[...],
        dimension_numbers=(((1,), (1,)), ((), ())),
        preferred_element_type=jnp.float32,
    )
    h = jnp.tanh(h + b1_ref[...])          # bias broadcast over lanes, tanh on EUP
    # Layer 2: contract N_neurons of h (N_neurons, TB) and W2 (out, in),
    # emitting (TB, N_feat) directly in the module's output layout.
    o = lax.dot_general(
        h, w2_ref[...],
        dimension_numbers=(((0,), (1,)), ((), ())),
        preferred_element_type=jnp.float32,
    )
    o_ref[...] = (o + b2_ref[...]).astype(o_ref.dtype)


def _choose_tile_rows(batch, cap_rows=8192):
    """Batch-row tile: round up to sublane granularity (8), cap at ~1 MiB of
    f32 rows.  The grid only splits when batch > cap, so each grid step always
    carries enough HBM traffic for a split to be worthwhile (v7x megacore),
    while small/medium batches run as a single step (no per-step overhead on
    single-TC v5e/v6e)."""
    r = ((batch + 7) // 8) * 8
    return min(r, cap_rows)


# ---------------------------------------------------------------------------
# Wrapper: ODEFunc.forward(t, y)  (t is ignored, matching the PyTorch module).
# ---------------------------------------------------------------------------
@jax.jit
def odefunc_forward(t, y, w1, b1, w2, b2):
    """Pallas implementation of ODEFunc.forward(t, y).

    y:  (B, N_feat) float32
    w1: (N_neurons, N_feat)   b1: (N_neurons,)   (PyTorch (out, in) layout)
    w2: (N_feat, N_neurons)   b2: (N_feat,)
    returns (B, N_feat) float32
    """
    del t  # unused, as in the reference module
    B, n_feat = y.shape
    n_neurons = w1.shape[0]

    tile_rows = _choose_tile_rows(B)
    b_pad = pl.cdiv(B, tile_rows) * tile_rows
    y_p = jnp.pad(y, ((0, b_pad - B), (0, 0)))      # zero rows, sliced away below

    # Biases shaped for in-kernel broadcasting.
    b1c = b1.reshape(n_neurons, 1)   # broadcast over lanes (batch) in layer 1
    b2r = b2.reshape(1, n_feat)      # broadcast over sublanes (batch) in layer 2

    grid = (b_pad // tile_rows,)

    # VMEM budget from the actual tile bytes: double-buffered in + out tiles,
    # resident weights/biases, plus headroom.  Safe on every generation.
    itemsize = jnp.dtype(y.dtype).itemsize
    tile_bytes = tile_rows * n_feat * itemsize
    weight_bytes = (w1.size + w2.size + b1.size + b2.size) * itemsize
    vmem_limit = int(4 * tile_bytes + weight_bytes + (4 << 20))

    out = pl.pallas_call(
        odefunc_kernel,
        out_shape=jax.ShapeDtypeStruct((b_pad, n_feat), y.dtype),
        grid_spec=pltpu.PrefetchScalarGridSpec(
            num_scalar_prefetch=0,
            grid=grid,
            in_specs=[
                # Weights / biases: same block every step -> resident in VMEM.
                pl.BlockSpec((n_neurons, n_feat), lambda i: (0, 0)),   # W1
                pl.BlockSpec((n_neurons, 1), lambda i: (0, 0)),        # b1
                pl.BlockSpec((n_feat, n_neurons), lambda i: (0, 0)),   # W2
                pl.BlockSpec((1, n_feat), lambda i: (0, 0)),           # b2
                # State tile: native (rows, feat) layout, batch on sublanes.
                pl.BlockSpec((tile_rows, n_feat), lambda i: (i, 0)),   # y tile
            ],
            out_specs=pl.BlockSpec((tile_rows, n_feat), lambda i: (i, 0)),
        ),
        compiler_params=pltpu.CompilerParams(
            dimension_semantics=("parallel",),
            vmem_limit_bytes=vmem_limit,
        ),
    )(w1, b1c, w2, b2r, y_p)

    # Drop the row padding; already in the module's (B, N_feat) convention.
    return out[:B]


# ---------------------------------------------------------------------------
# Parameter init matching nn.init.normal_(std=0.1) / constant_(0), PyTorch shapes.
# ---------------------------------------------------------------------------
def init_odefunc_params(key, n_feat, n_neurons, dtype=jnp.float32):
    k1, k2 = jax.random.split(key)
    w1 = (0.1 * jax.random.normal(k1, (n_neurons, n_feat))).astype(dtype)
    b1 = jnp.zeros((n_neurons,), dtype=dtype)
    w2 = (0.1 * jax.random.normal(k2, (n_feat, n_neurons))).astype(dtype)
    b2 = jnp.zeros((n_feat,), dtype=dtype)
    return w1, b1, w2, b2


def _reference(y, w1, b1, w2, b2):
    # Plain-JAX reference with PyTorch semantics: tanh(y @ W1^T + b1) @ W2^T + b2
    h = jnp.tanh(y @ w1.T + b1)
    return h @ w2.T + b2


if __name__ == "__main__":
    key = jax.random.PRNGKey(0)
    k_y, k_p, k_y2 = jax.random.split(key, 3)

    B = 8           # batch of states
    N_feat = 32     # input features
    N_neurons = 64  # hidden neurons

    y = jax.random.normal(k_y, (B, N_feat), dtype=jnp.float32)
    t = jnp.zeros((), dtype=jnp.float32)  # unused by the forward pass
    w1, b1, w2, b2 = init_odefunc_params(k_p, N_feat, N_neurons)

    out = odefunc_forward(t, y, w1, b1, w2, b2)
    out = jax.block_until_ready(out)
    ref = _reference(y, w1, b1, w2, b2)
    assert out.shape == (B, N_feat)
    assert jnp.allclose(out, ref, atol=1e-5, rtol=1e-5)

    # Larger batch: exercises row padding (520 -> 8-aligned) + bigger tiles.
    B2 = 520
    y2 = jax.random.normal(k_y2, (B2, N_feat), dtype=jnp.float32)
    out2 = jax.block_until_ready(odefunc_forward(t, y2, w1, b1, w2, b2))
    ref2 = _reference(y2, w1, b1, w2, b2)
    assert out2.shape == (B2, N_feat)
    assert jnp.allclose(out2, ref2, atol=1e-5, rtol=1e-5)

    print("KERNEL_OK")
</pallas_src>

<mosaic_0001>
module attributes {stable_mosaic.version = 11 : i64} {
  func.func @odefunc_kernel(%arg0: i32, %arg1: memref<64x32xf32, #tpu.memory_space<vmem>>, %arg2: memref<64x1xf32, #tpu.memory_space<vmem>>, %arg3: memref<32x64xf32, #tpu.memory_space<vmem>>, %arg4: memref<1x32xf32, #tpu.memory_space<vmem>>, %arg5: memref<8x32xf32, #tpu.memory_space<vmem>>, %arg6: memref<8x32xf32, #tpu.memory_space<vmem>>) attributes {dimension_semantics = [#tpu.dimension_semantics<parallel>], iteration_bounds = array<i64: 1>, scalar_prefetch = 0 : i64, scratch_operands = 0 : i64, tpu.core_type = #tpu.core_type<tc>, window_params = [{pipeline_mode = #tpu.pipeline_mode<synchronous>, transform_indices = @transform_0, window_bounds = array<i64: 64, 32>}, {pipeline_mode = #tpu.pipeline_mode<synchronous>, transform_indices = @transform_1, window_bounds = array<i64: 64, 1>}, {pipeline_mode = #tpu.pipeline_mode<synchronous>, transform_indices = @transform_2, window_bounds = array<i64: 32, 64>}, {pipeline_mode = #tpu.pipeline_mode<synchronous>, transform_indices = @transform_3, window_bounds = array<i64: 1, 32>}, {transform_indices = @transform_4, window_bounds = array<i64: 8, 32>}, {transform_indices = @transform_5, window_bounds = array<i64: 8, 32>}]} {
    %c0 = arith.constant 0 : index
    %c0_0 = arith.constant 0 : index
    %0 = vector.load %arg1[%c0, %c0_0] : memref<64x32xf32, #tpu.memory_space<vmem>>, vector<64x32xf32>
    %c0_1 = arith.constant 0 : index
    %c0_2 = arith.constant 0 : index
    %1 = vector.load %arg5[%c0_1, %c0_2] : memref<8x32xf32, #tpu.memory_space<vmem>>, vector<8x32xf32>
    %cst = arith.constant dense<0.000000e+00> : vector<64x8xf32>
    %2 = tpu.matmul %0, %1, %cst {dimension_numbers = #tpu.dot_dimension_numbers<[1], [1], [0], [0], [0, 0, 1, 0], [], []>} : vector<64x32xf32>, vector<8x32xf32>, vector<64x8xf32> -> vector<64x8xf32>
    %c0_3 = arith.constant 0 : index
    %c0_4 = arith.constant 0 : index
    %3 = vector.load %arg2[%c0_3, %c0_4] : memref<64x1xf32, #tpu.memory_space<vmem>>, vector<64x1xf32>
    %4 = vector.broadcast %3 : vector<64x1xf32> to vector<64x8xf32>
    %5 = arith.addf %2, %4 : vector<64x8xf32>
    %6 = math.tanh %5 : vector<64x8xf32>
    %c0_5 = arith.constant 0 : index
    %c0_6 = arith.constant 0 : index
    %7 = vector.load %arg3[%c0_5, %c0_6] : memref<32x64xf32, #tpu.memory_space<vmem>>, vector<32x64xf32>
    %cst_7 = arith.constant dense<0.000000e+00> : vector<8x32xf32>
    %8 = tpu.matmul %6, %7, %cst_7 {dimension_numbers = #tpu.dot_dimension_numbers<[0], [1], [1], [0], [0, 1, 1, 0], [], []>} : vector<64x8xf32>, vector<32x64xf32>, vector<8x32xf32> -> vector<8x32xf32>
    %c0_8 = arith.constant 0 : index
    %c0_9 = arith.constant 0 : index
    %9 = vector.load %arg4[%c0_8, %c0_9] : memref<1x32xf32, #tpu.memory_space<vmem>>, vector<1x32xf32>
    %10 = vector.broadcast %9 : vector<1x32xf32> to vector<8x32xf32>
    %11 = arith.addf %8, %10 : vector<8x32xf32>
    %c0_10 = arith.constant 0 : index
    %c0_11 = arith.constant 0 : index
    %12 = vector.load %arg6[%c0_10, %c0_11] : memref<8x32xf32, #tpu.memory_space<vmem>>, vector<8x32xf32>
    tpu.vector_store %arg6[%c0_10, %c0_11], %11 {strides = array<i32>} : memref<8x32xf32, #tpu.memory_space<vmem>>, vector<8x32xf32>,
    return
  }
  func.func @transform_0(%arg0: i32) -> (i32, i32) {
    %c0_i32 = arith.constant 0 : i32
    %c0_i32_0 = arith.constant 0 : i32
    %c0_i32_1 = arith.constant 0 : i32
    return %c0_i32, %c0_i32_0 : i32, i32
  }
  func.func @transform_1(%arg0: i32) -> (i32, i32) {
    %c0_i32 = arith.constant 0 : i32
    %c0_i32_0 = arith.constant 0 : i32
    %c0_i32_1 = arith.constant 0 : i32
    return %c0_i32, %c0_i32_0 : i32, i32
  }
  func.func @transform_2(%arg0: i32) -> (i32, i32) {
    %c0_i32 = arith.constant 0 : i32
    %c0_i32_0 = arith.constant 0 : i32
    %c0_i32_1 = arith.constant 0 : i32
    return %c0_i32, %c0_i32_0 : i32, i32
  }
  func.func @transform_3(%arg0: i32) -> (i32, i32) {
    %c0_i32 = arith.constant 0 : i32
    %c0_i32_0 = arith.constant 0 : i32
    %c0_i32_1 = arith.constant 0 : i32
    return %c0_i32, %c0_i32_0 : i32, i32
  }
  func.func @transform_4(%arg0: i32) -> (i32, i32) {
    %c0_i32 = arith.constant 0 : i32
    %c0_i32_0 = arith.constant 0 : i32
    return %arg0, %c0_i32 : i32, i32
  }
  func.func @transform_5(%arg0: i32) -> (i32, i32) {
    %c0_i32 = arith.constant 0 : i32
    %c0_i32_0 = arith.constant 0 : i32
    return %arg0, %c0_i32 : i32, i32
  }
}

</mosaic_0001>

<bundles_post_ra>
// kernel: odefunc_forward.1
= control target key start
LH: loop header
LB: loop body
LE: loop exit
PB: predicated region body
PF: predicated region fallthrough
CT: control target
= control target key end

     0   :  { %vm78_vm0 = vcmask 261120   ;;  %v313_v2 = vmov 0   ;;  %s431_s0 = inlined_call_operand.vmem [shape: f32[64,32], index: 0, kind: input, shape index: {}]   ;;  %s432_s1 = inlined_call_operand.vmem [shape: f32[64,1], index: 1, kind: input, shape index: {}]   ;;  %s433_s2 = inlined_call_operand.vmem [shape: f32[32,64], index: 2, kind: input, shape index: {}]   ;;  %s434_s3 = inlined_call_operand.vmem [shape: f32[1,32], index: 3, kind: input, shape index: {}]   ;;  %s435_s4 = inlined_call_operand.vmem [shape: f32[8,32], index: 4, kind: input, shape index: {}]   ;;  %s436_s5 = inlined_call_operand.hbm [shape: f32[8,32], index: 5, kind: output, shape index: {}]  }
   0x1   :  { %v29_v0 = vld [vmem:[%s435_s4] sm:$0xff]  ;;  %267 = vset.pattern.permute.xlu0 %v313_v2  ;;  %v27_v4 = vld [vmem:[%s431_s0 + $0x30] sm:$0xff]  ;;  %268 = vset.pattern.permute.xlu1 %v313_v2  ;;  %v24_v6 = vld [vmem:[%s431_s0 + $0x18] sm:$0xff] }
   0x2   :  { %v30_v1 = vld [vmem:[%s432_s1] sm:$0xff]  ;;  %248 = vmatpush.xpose.msk.msra.mxu0 %vm78_vm0, %v29_v0  ;;  %263 = vmatpush.xpose.msk.msra.mxu3 %vm78_vm0, %v29_v0  ;;  %v32_v5 = vld [vmem:[%s432_s1 + $0x10] sm:$0xff] }
   0x3   :  { %v21_v3 = vld [vmem:[%s431_s0] sm:$0xff]  ;;  %40 = vperm.xlu0 %267, %v30_v1   ;;  %262 = vmatpush.xpose.msk.msra.mxu2 %vm78_vm0, %v29_v0 }
   0x4   :  { %50 = vperm.xlu1 %268, %v32_v5   ;;  %269 = vset.pattern.permute.xlu2 %v313_v2  ;;  %v34_v7 = vld [vmem:[%s432_s1 + $0x20] sm:$0xff] }
   0x5   :  { %249 = vmatmul.msk.f32.vlgmr.msra.gmra.mxu0 %vm78_vm0, %v21_v3  ;;  %255 = vmatmul.msk.f32.vlgmr.msra.gmra.mxu3 %vm78_vm0, %v27_v4 }
   0x6   :  { %252 = vmatmul.msk.f32.vlgmr.msra.gmra.mxu2 %vm78_vm0, %v24_v6  ;;  %60 = vperm.xlu2 %269, %v34_v7  }
   0x7   :  { %10 = vsyncpa [#allocation3], 0  ;;  %v31_v8 = vld [vmem:[%s432_s1 + $0x8] sm:$0xff]  ;;  %v33_v10 = vld [vmem:[%s432_s1 + $0x18] sm:$0xff]  ;;  %vm195_vm1 = vcmask 523264   ;;  %s314_s7 = smov [#allocation2]  }
   0x8   :  { %v22_v9 = vld [vmem:[%s431_s0 + $0x8] sm:$0xff]  ;;  %v28_v11 = vld [vmem:[%s431_s0 + $0x38] sm:$0xff]  ;;  %v25_v12 = vld [vmem:[%s431_s0 + $0x20] sm:$0xff]  ;;  %s237_s8 = sshll.u32 %s314_s7, 4  ;;  %s239_s11 = sshll.u32 %s436_s5, 4  ;;  %s238_s8 = int_to_ptr.vmem [resolvable:$true] %s237_s8  ;;  %s240_s11 = int_to_ptr.hbm [resolvable:$true] %s239_s11 }
   0x9   :  { %v35_v13 = vld [vmem:[%s432_s1 + $0x28] sm:$0xff]  ;;  %v36_v14 = vld [vmem:[%s432_s1 + $0x30] sm:$0xff]  ;;  %v37_v16 = vld [vmem:[%s432_s1 + $0x38] sm:$0xff] }
   0xa   :  { %v23_v15 = vld [vmem:[%s431_s0 + $0x10] sm:$0xff]  ;;  %v26_v17 = vld [vmem:[%s431_s0 + $0x28] sm:$0xff]  ;;  %v158_v37 = vld [vmem:[%s433_s2 + $0x18] sm:$0xff] }
   0xb   :  { %45 = vperm.xlu0 %267, %v31_v8   ;;  %257 = vmatpush.xpose.msk.msra.mxu1 %vm195_vm1, %v158_v37  ;;  %v157_v40 = vld [vmem:[%s433_s2 + $0x10] sm:$0xff]  ;;  %v156_v43 = vld [vmem:[%s433_s2 + $0x8] sm:$0xff]  ;;  %v155_v45 = vld [vmem:[%s433_s2] sm:$0xff] }
   0xc   :  { %55 = vperm.xlu1 %268, %v33_v10   ;;  %v270_v55 = vld [vmem:[%s434_s3] ss:$0 sm:$0xff] }
   0xd   :  { %250 = vmatmul.msk.f32.gmra.mxu0 %vm78_vm0, %v22_v9  ;;  %256 = vmatmul.msk.f32.gmra.mxu3 %vm78_vm0, %v28_v11 }
   0xe   :  { %253 = vmatmul.msk.f32.gmra.mxu2 %vm78_vm0, %v25_v12  ;;  %65 = vperm.xlu2 %269, %v35_v13  }
   0xf   :  { %258 = vmatpush.xpose.msk.msra.mxu1 %vm195_vm1, %v157_v40 }
  0x13   :  { %70 = vperm.xlu0 %267, %v36_v14   ;;  %259 = vmatpush.xpose.msk.msra.mxu1 %vm195_vm1, %v156_v43 }
  0x14   :  { %75 = vperm.xlu1 %268, %v37_v16  }
  0x15   :  { %251 = vmatmul.msk.f32.gmra.mxu0 %vm78_vm0, %v23_v15 }
  0x16   :  { %254 = vmatmul.msk.f32.gmra.mxu2 %vm78_vm0, %v26_v17 }
  0x17   :  { %260 = vmatpush.xpose.msk.msra.mxu1 %vm195_vm1, %v155_v45 }
  0x60   :  { %v61_v33 = vpop.permute.xlu2 %60 }
  0x68   :  { %v66_v38 = vpop.permute.xlu2 %65 }
  0x75   :  { %v41_v18 = vpop.permute.xlu0 %40 }
  0x76   :  { %v51_v25 = vpop.permute.xlu1 %50 }
  0x7d   :  { %v46_v21 = vpop.permute.xlu0 %45 }
  0x7e   :  { %v56_v30 = vpop.permute.xlu1 %55 }
  0x82   :  { %v123_v19 = vpop.f32.mrf.mxu0 }
  0x83   :  { %v124_v20 = vadd.f32 %v123_v19, %v41_v18 }
  0x85   :  { %271 = vtanh.f32 %v124_v20  ;;  %v71_v46 = vpop.permute.xlu0 %70 }
  0x86   :  { %v76_v49 = vpop.permute.xlu1 %75 }
  0x88   :  { %v141_v44 = vpop.f32.mrf.mxu3 }
  0x89   :  { %v132_v27 = vpop.f32.mrf.mxu2  ;;  %v142_v47 = vadd.f32 %v141_v44, %v71_v46 }
  0x8a   :  { %v126_v22 = vpop.f32.mrf.mxu0  ;;  %v133_v31 = vadd.f32 %v132_v27, %v56_v30 }
  0x8b   :  { %v272_v23 = vpop.eup %271  ;;  %v127_v24 = vadd.f32 %v126_v22, %v46_v21 }
  0x8c   :  { %163 = vxpose.xlu2.b32.start [1/8] (short) (narrow) %v272_v23, 8 }
  0x8d   :  { %273 = vtanh.f32 %v127_v24 }
  0x90   :  { %v144_v50 = vpop.f32.mrf.mxu3 }
  0x91   :  { %v135_v34 = vpop.f32.mrf.mxu2  ;;  %v145_v51 = vadd.f32 %v144_v50, %v76_v49 }
  0x92   :  { %v129_v26 = vpop.f32.mrf.mxu0  ;;  %v136_v35 = vadd.f32 %v135_v34, %v61_v33 }
  0x93   :  { %v274_v28 = vpop.eup %273  ;;  %v130_v29 = vadd.f32 %v129_v26, %v51_v25 }
  0x94   :  { %164 = vxpose.xlu2.b32.cont [2/8] (short) (narrow) %v274_v28, 8 }
  0x95   :  { %275 = vtanh.f32 %v130_v29 }
  0x96   :  { %277 = vtanh.f32 %v133_v31 }
  0x97   :  { %279 = vtanh.f32 %v136_v35 }
  0x99   :  { %v138_v39 = vpop.f32.mrf.mxu2 }
  0x9a   :  { %v139_v42 = vadd.f32 %v138_v39, %v66_v38 }
  0x9b   :  { %v276_v32 = vpop.eup %275 }
  0x9c   :  { %165 = vxpose.xlu2.b32.cont [3/8] (short) (narrow) %v276_v32, 8  ;;  %v278_v36 = vpop.eup %277  ;;  %281 = vtanh.f32 %v139_v42 }
  0x9d   :  { %v280_v41 = vpop.eup %279  ;;  %283 = vtanh.f32 %v142_v47 }
  0x9e   :  { %285 = vtanh.f32 %v145_v51 }
  0xa2   :  { %v282_v48 = vpop.eup %281 }
  0xa3   :  { %v284_v52 = vpop.eup %283 }
  0xa4   :  { %166 = vxpose.xlu2.b32.cont [4/8] (short) (narrow) %v278_v36, 8  ;;  %v286_v53 = vpop.eup %285 }
  0xac   :  { %167 = vxpose.xlu2.b32.cont [5/8] (short) (narrow) %v280_v41, 8 }
  0xb4   :  { %168 = vxpose.xlu2.b32.cont [6/8] (short) (narrow) %v282_v48, 8 }
  0xbc   :  { %169 = vxpose.xlu2.b32.cont [7/8] (short) (narrow) %v284_v52, 8 }
  0xc4   :  { %170 = vxpose.xlu2.b32.end [8/8] (short) (narrow) %v286_v53, 8 }
 0x125   :  { %v179_v54 = vpop.trf.xlu2 }
 0x126   :  { %261 = vmatmul.msk.f32.vlgmr.msra.gmra.mxu1 %vm195_vm1, %v179_v54 }
 0x1a3   :  { %v228_v56 = vpop.f32.mrf.mxu1 }
 0x1a4   :  { %v229_v57 = vadd.f32 %v270_v55, %v228_v56 }
 0x1a6   :  { %231 = vst.msk [vmem:[#allocation2] sm:$0xff] %vm78_vm0, %v229_v57 }
 0x1a7   :  { %242 = dma.vmem_to_hbm [thread:$0]  %s238_s8, 128, %s240_s11, [#allocation3]  }
 0x1a8   :  { %311 = dma.done.wait [#allocation3], 128  }
 0x1a9   :  { %312 = vsyncadd [#allocation3], 4294967168 }
 0x1aa   :  { %247 = vsyncpa [#allocation3], 1 }

</bundles_post_ra>
